<compile_context>
chip_gen: v6e
topology: v6e:2x2x1
jax: 0.10.0
libtpu: 0.0.40
codegen_flags: <defaults>
</compile_context>

<pallas_src>
import functools

import jax
import jax.numpy as jnp
from jax.experimental import pallas as pl
from jax.experimental.pallas import tpu as pltpu


def _input_embedding_kernel(x_ref, w_ref, o_ref, *, tn):
    # x_ref: (TM, I)      current row tile (native dtype)
    # w_ref: (I, 2*tn)    fused [gate_tile | emb_tile] weight for this H tile
    # o_ref: (TM, tn)     output tile
    y = jnp.dot(x_ref[...], w_ref[...], preferred_element_type=jnp.float32)
    gate = y[:, :tn]
    emb = y[:, tn:]
    o_ref[...] = (gate * jax.nn.sigmoid(gate) * emb).astype(o_ref.dtype)


def _pick_tn(hidden_size, tn_target):
    """Lane tile over H: a multiple of 128 dividing H, or H itself if H % 128 != 0."""
    if hidden_size % 128 != 0:
        return hidden_size
    tn = min(tn_target, hidden_size)
    tn -= tn % 128
    tn = max(tn, 128)
    while hidden_size % tn != 0:
        tn -= 128
    return tn


def time_moe_input_embedding(x, w_gate, w_emb, *, tile_m=256, tn_target=512):
    """x: [..., input_size]; w_gate / w_emb: [hidden_size, input_size] (PyTorch layout)."""
    *lead, input_size = x.shape
    hidden_size = w_gate.shape[0]

    x2d = x.reshape(-1, input_size)
    n_rows = x2d.shape[0]

    # ---- H tiling (lane-dense output blocks) ----
    tn = _pick_tn(hidden_size, tn_target)
    n_h = hidden_size // tn

    # ---- Row padding so ragged batch*seq works with a large tile_m ----
    n_pad = pl.cdiv(n_rows, tile_m) * tile_m
    if n_pad != n_rows:
        x2d = jnp.pad(x2d, ((0, n_pad - n_rows), (0, 0)))

    # ---- Fused weight: for each H tile j, layout is [gate_cols_j | emb_cols_j] ----
    # (wrapper-side glue, plain JAX). Cast to x.dtype so the MXU consumes native dtype.
    wg_t = w_gate.T.astype(x.dtype)  # (I, H)
    we_t = w_emb.T.astype(x.dtype)   # (I, H)
    w_fused = jnp.concatenate(
        [wg_t.reshape(input_size, n_h, tn), we_t.reshape(input_size, n_h, tn)],
        axis=2,
    ).reshape(input_size, 2 * hidden_size)  # (I, n_h * 2*tn)

    kernel = functools.partial(_input_embedding_kernel, tn=tn)

    out2d = pl.pallas_call(
        kernel,
        out_shape=jax.ShapeDtypeStruct((n_pad, hidden_size), x.dtype),
        grid_spec=pltpu.PrefetchScalarGridSpec(
            num_scalar_prefetch=0,
            grid=(n_pad // tile_m, n_h),
            in_specs=[
                # row tile of x; I is tiny and taken whole
                pl.BlockSpec((tile_m, input_size), lambda i, j: (i, 0)),
                # fused weight tile for H-tile j: (I, 2*tn)
                pl.BlockSpec((input_size, 2 * tn), lambda i, j: (0, j)),
            ],
            out_specs=pl.BlockSpec((tile_m, tn), lambda i, j: (i, j)),
        ),
        compiler_params=pltpu.CompilerParams(
            dimension_semantics=("parallel", "parallel"),
            vmem_limit_bytes=48 * 1024 * 1024,
        ),
    )(x2d, w_fused)

    out2d = out2d[:n_rows]
    return out2d.reshape(*lead, hidden_size)


def _reference(x, w_gate, w_emb):
    gate = x @ w_gate.T
    emb = x @ w_emb.T
    return jax.nn.silu(gate) * emb


if __name__ == "__main__":
    key = jax.random.PRNGKey(0)
    kx, kg, ke, kx2, kg2, ke2 = jax.random.split(key, 6)

    # --- Test 1: shapes implied by the module (small) ---
    batch, seq, input_size, hidden_size = 2, 8, 4, 32
    x = jax.random.normal(kx, (batch, seq, input_size), dtype=jnp.float32)
    w_gate = jax.random.normal(kg, (hidden_size, input_size), dtype=jnp.float32) * 0.1
    w_emb = jax.random.normal(ke, (hidden_size, input_size), dtype=jnp.float32) * 0.1

    out = time_moe_input_embedding(x, w_gate, w_emb)
    out = jax.block_until_ready(out)
    ref = _reference(x, w_gate, w_emb)
    assert out.shape == (batch, seq, hidden_size)
    assert jnp.allclose(out, ref, atol=1e-5, rtol=1e-5), "mismatch vs reference (test 1)"

    # --- Test 2: ragged row count (padding path) + lane-dense H (multiple of 128) ---
    batch2, seq2, input_size2, hidden_size2 = 3, 5, 2, 256
    x2 = jax.random.normal(kx2, (batch2, seq2, input_size2), dtype=jnp.float32)
    w_gate2 = jax.random.normal(kg2, (hidden_size2, input_size2), dtype=jnp.float32) * 0.1
    w_emb2 = jax.random.normal(ke2, (hidden_size2, input_size2), dtype=jnp.float32) * 0.1

    out2 = time_moe_input_embedding(x2, w_gate2, w_emb2)
    out2 = jax.block_until_ready(out2)
    ref2 = _reference(x2, w_gate2, w_emb2)
    assert out2.shape == (batch2, seq2, hidden_size2)
    assert jnp.allclose(out2, ref2, atol=1e-5, rtol=1e-5), "mismatch vs reference (test 2)"

    print("KERNEL_OK")
</pallas_src>

<mosaic_0001>
module attributes {stable_mosaic.version = 11 : i64} {
  func.func @_input_embedding_kernel(%arg0: i32, %arg1: i32, %arg2: memref<256x4xf32, #tpu.memory_space<vmem>>, %arg3: memref<4x64xf32, #tpu.memory_space<vmem>>, %arg4: memref<256x32xf32, #tpu.memory_space<vmem>>) attributes {dimension_semantics = [#tpu.dimension_semantics<parallel>, #tpu.dimension_semantics<parallel>], iteration_bounds = array<i64: 1, 1>, scalar_prefetch = 0 : i64, scratch_operands = 0 : i64, tpu.core_type = #tpu.core_type<tc>, window_params = [{transform_indices = @transform_0, window_bounds = array<i64: 256, 4>}, {transform_indices = @transform_1, window_bounds = array<i64: 4, 64>}, {transform_indices = @transform_2, window_bounds = array<i64: 256, 32>}]} {
    %c0 = arith.constant 0 : index
    %c0_0 = arith.constant 0 : index
    %0 = vector.load %arg2[%c0, %c0_0] : memref<256x4xf32, #tpu.memory_space<vmem>>, vector<256x4xf32>
    %c0_1 = arith.constant 0 : index
    %c0_2 = arith.constant 0 : index
    %1 = vector.load %arg3[%c0_1, %c0_2] : memref<4x64xf32, #tpu.memory_space<vmem>>, vector<4x64xf32>
    %cst = arith.constant dense<0.000000e+00> : vector<256x64xf32>
    %2 = tpu.matmul %0, %1, %cst {dimension_numbers = #tpu.dot_dimension_numbers<[1], [0], [0], [1], [0, 0, 1, 1], [], []>} : vector<256x4xf32>, vector<4x64xf32>, vector<256x64xf32> -> vector<256x64xf32>
    %3 = vector.extract_strided_slice %2 {offsets = [0, 0], sizes = [256, 32], strides = [1, 1]} : vector<256x64xf32> to vector<256x32xf32>
    %4 = vector.extract_strided_slice %2 {offsets = [0, 32], sizes = [256, 32], strides = [1, 1]} : vector<256x64xf32> to vector<256x32xf32>
    %5 = arith.negf %3 : vector<256x32xf32>
    %6 = math.exp %5 : vector<256x32xf32>
    %cst_3 = arith.constant 1.000000e+00 : f32
    %7 = vector.broadcast %cst_3 : f32 to vector<256x32xf32>
    %8 = arith.addf %7, %6 : vector<256x32xf32>
    %9 = arith.divf %7, %8 : vector<256x32xf32>
    %10 = arith.mulf %3, %9 : vector<256x32xf32>
    %11 = arith.mulf %10, %4 : vector<256x32xf32>
    %c0_4 = arith.constant 0 : index
    %c0_5 = arith.constant 0 : index
    %12 = vector.load %arg4[%c0_4, %c0_5] : memref<256x32xf32, #tpu.memory_space<vmem>>, vector<256x32xf32>
    tpu.vector_store %arg4[%c0_4, %c0_5], %11 {strides = array<i32>} : memref<256x32xf32, #tpu.memory_space<vmem>>, vector<256x32xf32>,
    return
  }
  func.func @transform_0(%arg0: i32, %arg1: i32) -> (i32, i32) {
    %c0_i32 = arith.constant 0 : i32
    %c0_i32_0 = arith.constant 0 : i32
    return %arg0, %c0_i32 : i32, i32
  }
  func.func @transform_1(%arg0: i32, %arg1: i32) -> (i32, i32) {
    %c0_i32 = arith.constant 0 : i32
    %c0_i32_0 = arith.constant 0 : i32
    return %c0_i32, %arg1 : i32, i32
  }
  func.func @transform_2(%arg0: i32, %arg1: i32) -> (i32, i32) {
    %c0_i32 = arith.constant 0 : i32
    return %arg0, %arg1 : i32, i32
  }
}

</mosaic_0001>

<bundles_post_ra>
// kernel: tpu_custom_call.1
= control target key start
LH: loop header
LB: loop body
LE: loop exit
PB: predicated region body
PF: predicated region fallthrough
CT: control target
= control target key end

     0   :  { %vm141_vm0 = vcmask 1043456   ;;  %vm44_vm1 = vcmask 31744   ;;  %s1070_s17 = smov 96   ;;  %vm754_vm2 = vcmask 261120   ;;  %s1537_s1 = inlined_call_operand.vmem [shape: f32[4,64], index: 1, kind: input, shape index: {}]   ;;  %s1538_s0 = inlined_call_operand.vmem [shape: f32[256,4], index: 0, kind: input, shape index: {}]   ;;  %s1539_s2 = inlined_call_operand.vmem [shape: f32[256,32], index: 2, kind: output, shape index: {}]  }
   0x1   :  { %v43_v0 = vld [vmem:[%s1537_s1] sm:$0xf]  ;;  %v12_v3 = vld [vmem:[%s1538_s0 + $0x8] sm:$0xff]  ;;  %v13_v5 = vld [vmem:[%s1538_s0 + $0x10] sm:$0xff] }
   0x2   :  { %v11_v1 = vld [vmem:[%s1538_s0] sm:$0xff]  ;;  %889 = vmatprep.subr.msk.mxu0 %vm141_vm0, %v43_v0  ;;  %939 = vmatprep.subr.msk.mxu1 %vm141_vm0, %v43_v0  ;;  %v28_v4 = vld [vmem:[%s1538_s0 + $0x88] sm:$0xff]  ;;  %v29_v6 = vld [vmem:[%s1538_s0 + $0x90] sm:$0xff] }
   0x3   :  { %v27_v2 = vld [vmem:[%s1538_s0 + $0x80] sm:$0xff]  ;;  %890 = vmatpush3.msk.msra.mxu0 %vm141_vm0, %v43_v0  ;;  %940 = vmatpush3.msk.msra.mxu1 %vm141_vm0, %v43_v0  ;;  %v14_v7 = vld [vmem:[%s1538_s0 + $0x18] sm:$0xff]  ;;  %v16_v11 = vld [vmem:[%s1538_s0 + $0x28] sm:$0xff] }
   0x4   :  { %891 = vmatprep.mubr.msk.f32.mxu0 %vm44_vm1, %v11_v1  ;;  %915 = vmatprep.mubr.msk.f32.mxu1 %vm44_vm1, %v27_v2  ;;  %v30_v8 = vld [vmem:[%s1538_s0 + $0x98] sm:$0xff]  ;;  %v15_v9 = vld [vmem:[%s1538_s0 + $0x20] sm:$0xff]  ;;  %v32_v12 = vld [vmem:[%s1538_s0 + $0xa8] sm:$0xff] }
   0x5   :  { %892 = vmatmul.mubr.msk.f32.vlgmr.msra.gmra.mxu0 %vm44_vm1, %v12_v3  ;;  %916 = vmatmul.mubr.msk.f32.vlgmr.msra.gmra.mxu1 %vm44_vm1, %v28_v4  ;;  %v31_v10 = vld [vmem:[%s1538_s0 + $0xa0] sm:$0xff]  ;;  %v17_v13 = vld [vmem:[%s1538_s0 + $0x30] sm:$0xff]  ;;  %v18_v15 = vld [vmem:[%s1538_s0 + $0x38] sm:$0xff] }
   0x6   :  { %894 = vmatprep.mubr.msk.f32.mxu0 %vm44_vm1, %v13_v5  ;;  %918 = vmatprep.mubr.msk.f32.mxu1 %vm44_vm1, %v29_v6  ;;  %v33_v14 = vld [vmem:[%s1538_s0 + $0xb0] sm:$0xff]  ;;  %v34_v16 = vld [vmem:[%s1538_s0 + $0xb8] sm:$0xff]  ;;  %v19_v17 = vld [vmem:[%s1538_s0 + $0x40] sm:$0xff] }
   0x7   :  { %v35_v18 = vld [vmem:[%s1538_s0 + $0xc0] sm:$0xff]  ;;  %v20_v19 = vld [vmem:[%s1538_s0 + $0x48] sm:$0xff]  ;;  %v21_v21 = vld [vmem:[%s1538_s0 + $0x50] sm:$0xff] }
   0x8   :  { %v36_v20 = vld [vmem:[%s1538_s0 + $0xc8] sm:$0xff]  ;;  %v37_v22 = vld [vmem:[%s1538_s0 + $0xd0] sm:$0xff]  ;;  %v22_v23 = vld [vmem:[%s1538_s0 + $0x58] sm:$0xff] }
   0x9   :  { %895 = vmatmul.mubr.msk.f32.gmra.mxu0 %vm44_vm1, %v14_v7  ;;  %919 = vmatmul.mubr.msk.f32.gmra.mxu1 %vm44_vm1, %v30_v8  ;;  %v38_v24 = vld [vmem:[%s1538_s0 + $0xd8] sm:$0xff]  ;;  %v23_v25 = vld [vmem:[%s1538_s0 + $0x60] sm:$0xff]  ;;  %v24_v27 = vld [vmem:[%s1538_s0 + $0x68] sm:$0xff] }
   0xa   :  { %897 = vmatprep.mubr.msk.f32.mxu0 %vm44_vm1, %v15_v9  ;;  %921 = vmatprep.mubr.msk.f32.mxu1 %vm44_vm1, %v31_v10  ;;  %v39_v26 = vld [vmem:[%s1538_s0 + $0xe0] sm:$0xff]  ;;  %v40_v28 = vld [vmem:[%s1538_s0 + $0xe8] sm:$0xff]  ;;  %v25_v29 = vld [vmem:[%s1538_s0 + $0x70] sm:$0xff] }
   0xb   :  { %v41_v30 = vld [vmem:[%s1538_s0 + $0xf0] sm:$0xff]  ;;  %v26_v31 = vld [vmem:[%s1538_s0 + $0x78] sm:$0xff] }
   0xc   :  { %v42_v32 = vld [vmem:[%s1538_s0 + $0xf8] sm:$0xff] }
   0xd   :  { %898 = vmatmul.mubr.msk.f32.gmra.mxu0 %vm44_vm1, %v16_v11  ;;  %922 = vmatmul.mubr.msk.f32.gmra.mxu1 %vm44_vm1, %v32_v12 }
   0xe   :  { %900 = vmatprep.mubr.msk.f32.mxu0 %vm44_vm1, %v17_v13  ;;  %924 = vmatprep.mubr.msk.f32.mxu1 %vm44_vm1, %v33_v14 }
  0x11   :  { %901 = vmatmul.mubr.msk.f32.gmra.mxu0 %vm44_vm1, %v18_v15  ;;  %925 = vmatmul.mubr.msk.f32.gmra.mxu1 %vm44_vm1, %v34_v16 }
  0x12   :  { %903 = vmatprep.mubr.msk.f32.mxu0 %vm44_vm1, %v19_v17  ;;  %927 = vmatprep.mubr.msk.f32.mxu1 %vm44_vm1, %v35_v18 }
  0x15   :  { %904 = vmatmul.mubr.msk.f32.gmra.mxu0 %vm44_vm1, %v20_v19  ;;  %928 = vmatmul.mubr.msk.f32.gmra.mxu1 %vm44_vm1, %v36_v20 }
  0x16   :  { %906 = vmatprep.mubr.msk.f32.mxu0 %vm44_vm1, %v21_v21  ;;  %930 = vmatprep.mubr.msk.f32.mxu1 %vm44_vm1, %v37_v22 }
  0x19   :  { %907 = vmatmul.mubr.msk.f32.gmra.mxu0 %vm44_vm1, %v22_v23  ;;  %931 = vmatmul.mubr.msk.f32.gmra.mxu1 %vm44_vm1, %v38_v24 }
  0x1a   :  { %909 = vmatprep.mubr.msk.f32.mxu0 %vm44_vm1, %v23_v25  ;;  %933 = vmatprep.mubr.msk.f32.mxu1 %vm44_vm1, %v39_v26 }
  0x1d   :  { %910 = vmatmul.mubr.msk.f32.gmra.mxu0 %vm44_vm1, %v24_v27  ;;  %934 = vmatmul.mubr.msk.f32.gmra.mxu1 %vm44_vm1, %v40_v28 }
  0x1e   :  { %912 = vmatprep.mubr.msk.f32.mxu0 %vm44_vm1, %v25_v29  ;;  %936 = vmatprep.mubr.msk.f32.mxu1 %vm44_vm1, %v41_v30 }
  0x21   :  { %913 = vmatmul.mubr.msk.f32.gmra.mxu0 %vm44_vm1, %v26_v31  ;;  %937 = vmatmul.mubr.msk.f32.gmra.mxu1 %vm44_vm1, %v42_v32 }
  0xc5   :  { %v1217_v33 = vpop.f32.mrf.mxu0  ;;  %v1219_v34 = vpop.f32.mrf.mxu1 }
  0xc6   :  { %660 = vrot.lane.b32.xlu1 %v1219_v34, %s1070_s17  ;;  %628 = vrot.lane.b32.xlu0 %v1217_v33, %s1070_s17  ;;  %v825_v1 = vmul.f32 -1.442695, %v1217_v33  ;;  %v841_v2 = vmul.f32 -1.442695, %v1219_v34 }
  0xc7   :  { %v1225_v35 = vpop.f32.mrf.mxu0  ;;  %v1227_v36 = vpop.f32.mrf.mxu1 }
  0xc8   :  { %942 = vpow2.f32 %v825_v1  ;;  %v824_v3 = vmul.f32 -1.442695, %v1225_v35  ;;  %v840_v5 = vmul.f32 -1.442695, %v1227_v36 }
  0xc9   :  { %v1229_v37 = vpop.f32.mrf.mxu0  ;;  %v1235_v38 = vpop.f32.mrf.mxu1  ;;  %944 = vpow2.f32 %v841_v2 }
  0xca   :  { %626 = vrot.lane.b32.xlu0 %v1225_v35, %s1070_s17  ;;  %632 = vrot.lane.b32.xlu1 %v1229_v37, %s1070_s17  ;;  %v827_v4 = vmul.f32 -1.442695, %v1229_v37  ;;  %946 = vpow2.f32 %v824_v3  ;;  %v843_v6 = vmul.f32 -1.442695, %v1235_v38 }
  0xcb   :  { %v1237_v39 = vpop.f32.mrf.mxu0  ;;  %v1243_v40 = vpop.f32.mrf.mxu1 }
  0xcc   :  { %948 = vpow2.f32 %v827_v4  ;;  %v826_v7 = vmul.f32 -1.442695, %v1237_v39  ;;  %v842_v8 = vmul.f32 -1.442695, %v1243_v40 }
  0xcd   :  { %v1245_v41 = vpop.f32.mrf.mxu0  ;;  %v1251_v42 = vpop.f32.mrf.mxu1  ;;  %950 = vpow2.f32 %v840_v5 }
  0xce   :  { %658 = vrot.lane.b32.xlu0 %v1227_v36, %s1070_s17  ;;  %664 = vrot.lane.b32.xlu1 %v1235_v38, %s1070_s17  ;;  %952 = vpow2.f32 %v843_v6  ;;  %v829_v9 = vmul.f32 -1.442695, %v1245_v41  ;;  %v845_v13 = vmul.f32 -1.442695, %v1251_v42 }
  0xcf   :  { %v1253_v43 = vpop.f32.mrf.mxu0  ;;  %v1259_v44 = vpop.f32.mrf.mxu1  ;;  %954 = vpow2.f32 %v826_v7 }
  0xd0   :  { %956 = vpow2.f32 %v842_v8  ;;  %v828_v10 = vmul.f32 -1.442695, %v1253_v43  ;;  %v844_v14 = vmul.f32 -1.442695, %v1259_v44 }
  0xd1   :  { %v1261_v45 = vpop.f32.mrf.mxu0  ;;  %v1267_v46 = vpop.f32.mrf.mxu1  ;;  %958 = vpow2.f32 %v829_v9 }
  0xd2   :  { %662 = vrot.lane.b32.xlu0 %v1243_v40, %s1070_s17  ;;  %630 = vrot.lane.b32.xlu1 %v1237_v39, %s1070_s17  ;;  %960 = vpow2.f32 %v828_v10  ;;  %v831_v19 = vmul.f32 -1.442695, %v1261_v45  ;;  %v847_v25 = vmul.f32 -1.442695, %v1267_v46 }
  0xd3   :  { %v1269_v47 = vpop.f32.mrf.mxu0  ;;  %v1275_v48 = vpop.f32.mrf.mxu1  ;;  %962 = vpow2.f32 %v845_v13 }
  0xd4   :  { %964 = vpow2.f32 %v844_v14  ;;  %v830_v20 = vmul.f32 -1.442695, %v1269_v47  ;;  %v846_v27 = vmul.f32 -1.442695, %v1275_v48 }
  0xd5   :  { %v1277_v49 = vpop.f32.mrf.mxu0  ;;  %v1283_v50 = vpop.f32.mrf.mxu1 }
  0xd6   :  { %636 = vrot.lane.b32.xlu1 %v1245_v41, %s1070_s17  ;;  %634 = vrot.lane.b32.xlu0 %v1253_v43, %s1070_s17  ;;  %v943_v11 = vpop.eup %942  ;;  %v833_v3 = vmul.f32 -1.442695, %v1277_v49  ;;  %v849_v9 = vmul.f32 -1.442695, %v1283_v50 }
  0xd7   :  { %v1285_v51 = vpop.f32.mrf.mxu0  ;;  %v1291_v52 = vpop.f32.mrf.mxu1  ;;  %v467_v15 = vadd.f32 1.0, %v943_v11 }
  0xd8   :  { %v945_v12 = vpop.eup %944  ;;  %v832_v4 = vmul.f32 -1.442695, %v1285_v51  ;;  %v848_v11 = vmul.f32 -1.442695, %v1291_v52 }
  0xd9   :  { %v1293_v53 = vpop.f32.mrf.mxu0  ;;  %v1299_v54 = vpop.f32.mrf.mxu1  ;;  %v483_v17 = vadd.f32 1.0, %v945_v12  ;;  %966 = vrcp.f32 %v467_v15 }
  0xda   :  { %668 = vrot.lane.b32.xlu1 %v1251_v42, %s1070_s17  ;;  %666 = vrot.lane.b32.xlu0 %v1259_v44, %s1070_s17  ;;  %v947_v16 = vpop.eup %946 }
  0xdb   :  { %v1301_v55 = vpop.f32.mrf.mxu0  ;;  %v1307_v56 = vpop.f32.mrf.mxu1  ;;  %v466_v21 = vadd.f32 1.0, %v947_v16  ;;  %968 = vrcp.f32 %v483_v17  ;;  %v835_v17 = vmul.f32 -1.442695, %v1293_v53 }
  0xdc   :  { %v949_v18 = vpop.eup %948  ;;  %970 = vpow2.f32 %v831_v19  ;;  %v834_v19 = vmul.f32 -1.442695, %v1301_v55 }
  0xdd   :  { %v1309_v57 = vpop.f32.mrf.mxu0  ;;  %v1315_v58 = vpop.f32.mrf.mxu1  ;;  %v469_v23 = vadd.f32 1.0, %v949_v18  ;;  %972 = vpow2.f32 %v830_v20 }
  0xde   :  { %640 = vrot.lane.b32.xlu1 %v1261_v45, %s1070_s17  ;;  %638 = vrot.lane.b32.xlu0 %v1269_v47, %s1070_s17  ;;  %v951_v22 = vpop.eup %950  ;;  %974 = vrcp.f32 %v466_v21 }
  0xdf   :  { %v1317_v59 = vpop.f32.mrf.mxu0  ;;  %v1323_v60 = vpop.f32.mrf.mxu1  ;;  %v482_v29 = vadd.f32 1.0, %v951_v22  ;;  %976 = vrcp.f32 %v469_v23 }
  0xe0   :  { %v953_v24 = vpop.eup %952  ;;  %978 = vpow2.f32 %v847_v25 }
  0xe1   :  { %v1325_v61 = vpop.f32.mrf.mxu0  ;;  %v1331_v62 = vpop.f32.mrf.mxu1  ;;  %v485_v30 = vadd.f32 1.0, %v953_v24  ;;  %980 = vpow2.f32 %v846_v27 }
  0xe2   :  { %672 = vrot.lane.b32.xlu1 %v1267_v46, %s1070_s17  ;;  %670 = vrot.lane.b32.xlu0 %v1275_v48, %s1070_s17  ;;  %v955_v26 = vpop.eup %954  ;;  %982 = vrcp.f32 %v482_v29 }
  0xe3   :  { %v1333_v63 = vpop.f32.mrf.mxu0  ;;  %v1339_v0 = vpop.f32.mrf.mxu1  ;;  %v468_v31 = vadd.f32 1.0, %v955_v26  ;;  %984 = vrcp.f32 %v485_v30 }
  0xe4   :  { %v957_v28 = vpop.eup %956 }
  0xe5   :  { %v959_v32 = vpop.eup %958  ;;  %v484_v1 = vadd.f32 1.0, %v957_v28  ;;  %986 = vrcp.f32 %v468_v31  ;;  %v851_v31 = vmul.f32 -1.442695, %v1299_v54 }
  0xe6   :  { %644 = vrot.lane.b32.xlu1 %v1277_v49, %s1070_s17  ;;  %642 = vrot.lane.b32.xlu0 %v1285_v51, %s1070_s17  ;;  %v961_v2 = vpop.eup %960  ;;  %v471_v5 = vadd.f32 1.0, %v959_v32 }
  0xe7   :  { %v963_v6 = vpop.eup %962  ;;  %988 = vrcp.f32 %v484_v1  ;;  %v470_v7 = vadd.f32 1.0, %v961_v2 }
  0xe8   :  { %v965_v8 = vpop.eup %964  ;;  %990 = vpow2.f32 %v833_v3  ;;  %v487_v13 = vadd.f32 1.0, %v963_v6 }
  0xe9   :  { %v967_v10 = vpop.eup %966  ;;  %992 = vpow2.f32 %v832_v4  ;;  %v486_v15 = vadd.f32 1.0, %v965_v8 }
  0xea   :  { %676 = vrot.lane.b32.xlu1 %v1283_v50, %s1070_s17  ;;  %674 = vrot.lane.b32.xlu0 %v1291_v52, %s1070_s17  ;;  %v969_v12 = vpop.eup %968  ;;  %994 = vrcp.f32 %v471_v5  ;;  %v563_v21 = vmul.f32 %v967_v10, %v1217_v33 }
  0xeb   :  { %v971_v14 = vpop.eup %970  ;;  %996 = vrcp.f32 %v470_v7  ;;  %v579_v20 = vmul.f32 %v969_v12, %v1219_v34  ;;  %v850_v34 = vmul.f32 -1.442695, %v1307_v56 }
  0xec   :  { %v973_v16 = vpop.eup %972  ;;  %998 = vpow2.f32 %v849_v9  ;;  %v473_v23 = vadd.f32 1.0, %v971_v14 }
  0xed   :  { %v975_v18 = vpop.eup %974  ;;  %1000 = vpow2.f32 %v848_v11  ;;  %v472_v27 = vadd.f32 1.0, %v973_v16  ;;  %v837_v11 = vmul.f32 -1.442695, %v1309_v57 }
  0xee   :  { %648 = vrot.lane.b32.xlu1 %v1293_v53, %s1070_s17  ;;  %646 = vrot.lane.b32.xlu0 %v1301_v55, %s1070_s17  ;;  %v977_v22 = vpop.eup %976  ;;  %1002 = vrcp.f32 %v487_v13  ;;  %v562_v33 = vmul.f32 %v975_v18, %v1225_v35  ;;  %v836_v35 = vmul.f32 -1.442695, %v1317_v59 }
  0xef   :  { %v979_v26 = vpop.eup %978  ;;  %1004 = vrcp.f32 %v486_v15  ;;  %v565_v1 = vmul.f32 %v977_v22, %v1229_v37  ;;  %v853_v15 = vmul.f32 -1.442695, %v1315_v58 }
  0xf0   :  { %v981_v30 = vpop.eup %980  ;;  %1006 = vpow2.f32 %v835_v17  ;;  %v489_v3 = vadd.f32 1.0, %v979_v26 }
  0xf1   :  { %v983_v32 = vpop.eup %982  ;;  %1008 = vpow2.f32 %v834_v19  ;;  %v488_v7 = vadd.f32 1.0, %v981_v30  ;;  %v852_v19 = vmul.f32 -1.442695, %v1323_v60 }
  0xf2   :  { %680 = vrot.lane.b32.xlu1 %v1299_v54, %s1070_s17  ;;  %678 = vrot.lane.b32.xlu0 %v1307_v56, %s1070_s17  ;;  %v985_v2 = vpop.eup %984  ;;  %1010 = vrcp.f32 %v473_v23  ;;  %v578_v37 = vmul.f32 %v983_v32, %v1227_v36 }
  0xf3   :  { %v987_v6 = vpop.eup %986  ;;  %1012 = vrcp.f32 %v472_v27  ;;  %v581_v13 = vmul.f32 %v985_v2, %v1235_v38  ;;  %v839_v27 = vmul.f32 -1.442695, %v1325_v61 }
  0xf4   :  { %v989_v10 = vpop.eup %988  ;;  %1014 = vpow2.f32 %v851_v31  ;;  %v564_v38 = vmul.f32 %v987_v6, %v1237_v39  ;;  %v838_v31 = vmul.f32 -1.442695, %v1333_v63 }
  0xf5   :  { %v991_v12 = vpop.eup %990  ;;  %1016 = vpow2.f32 %v850_v34  ;;  %v580_v36 = vmul.f32 %v989_v10, %v1243_v40 }
  0xf6   :  { %652 = vrot.lane.b32.xlu1 %v1309_v57, %s1070_s17  ;;  %650 = vrot.lane.b32.xlu0 %v1317_v59, %s1070_s17  ;;  %v993_v14 = vpop.eup %992  ;;  %1018 = vrcp.f32 %v489_v3  ;;  %v475_v23 = vadd.f32 1.0, %v991_v12 }
  0xf7   :  { %v995_v18 = vpop.eup %994  ;;  %1020 = vrcp.f32 %v488_v7 }
  0xf8   :  { %v997_v22 = vpop.eup %996  ;;  %1022 = vpow2.f32 %v837_v11  ;;  %v567_v39 = vmul.f32 %v995_v18, %v1245_v41 }
  0xf9   :  { %1024 = vpow2.f32 %v836_v35  ;;  %v566_v3 = vmul.f32 %v997_v22, %v1253_v43 }
  0xfa   :  { %684 = vrot.lane.b32.xlu1 %v1315_v58, %s1070_s17  ;;  %682 = vrot.lane.b32.xlu0 %v1323_v60, %s1070_s17  ;;  %1026 = vpow2.f32 %v853_v15 }
  0xfb   :  { %1028 = vpow2.f32 %v852_v19 }
  0xfe   :  { %656 = vrot.lane.b32.xlu1 %v1325_v61, %s1070_s17  ;;  %654 = vrot.lane.b32.xlu0 %v1333_v63, %s1070_s17 }
 0x102   :  { %688 = vrot.lane.b32.xlu1 %v1331_v62, %s1070_s17  ;;  %686 = vrot.lane.b32.xlu0 %v1339_v0, %s1070_s17 }
 0x138   :  { %v661_v24 = vpop.permute.xlu1 %660  ;;  %v629_v25 = vpop.permute.xlu0 %628 }
 0x139   :  { %v739_v28 = vmul.f32 %v661_v24, %v579_v20  ;;  %v723_v29 = vmul.f32 %v629_v25, %v563_v21  ;;  %v999_v24 = vpop.eup %998  ;;  %v474_v25 = vadd.f32 1.0, %v993_v14  ;;  %1030 = vrcp.f32 %v475_v23 }
 0x13a   :  { %v1001_v26 = vpop.eup %1000 }
 0x13b   :  { %772 = vst.msk [vmem:[%s1539_s2 + $0x88] sm:$0xff] %vm754_vm2, %v739_v28  ;;  %756 = vst.msk [vmem:[%s1539_s2 + $0x8] sm:$0xff] %vm754_vm2, %v723_v29  ;;  %v1003_v30 = vpop.eup %1002  ;;  %1032 = vrcp.f32 %v474_v25  ;;  %v490_v40 = vadd.f32 1.0, %v1001_v26 }
 0x13c   :  { %v627_v4 = vpop.permute.xlu0 %626  ;;  %v633_v5 = vpop.permute.xlu1 %632  ;;  %1034 = vpow2.f32 %v839_v27  ;;  %v583_v43 = vmul.f32 %v1003_v30, %v1251_v42 }
 0x13d   :  { %v722_v8 = vmul.f32 %v627_v4, %v562_v33  ;;  %v725_v9 = vmul.f32 %v633_v5, %v565_v1  ;;  %v1005_v33 = vpop.eup %1004  ;;  %v491_v1 = vadd.f32 1.0, %v999_v24  ;;  %v855_v5 = vmul.f32 -1.442695, %v1331_v62 }
 0x13e   :  { %v1007_v2 = vpop.eup %1006  ;;  %1036 = vpow2.f32 %v838_v31 }
 0x13f   :  { %755 = vst.msk [vmem:[%s1539_s2] sm:$0xff] %vm754_vm2, %v722_v8  ;;  %758 = vst.msk [vmem:[%s1539_s2 + $0x18] sm:$0xff] %vm754_vm2, %v725_v9  ;;  %v1009_v4 = vpop.eup %1008  ;;  %v854_v9 = vmul.f32 -1.442695, %v1339_v0  ;;  %1038 = vrcp.f32 %v491_v1  ;;  %v477_v35 = vadd.f32 1.0, %v1007_v2 }
 0x140   :  { %v659_v16 = vpop.permute.xlu0 %658  ;;  %v665_v17 = vpop.permute.xlu1 %664  ;;  %1040 = vrcp.f32 %v490_v40  ;;  %v476_v41 = vadd.f32 1.0, %v1009_v4 }
 0x141   :  { %v738_v20 = vmul.f32 %v659_v16, %v578_v37  ;;  %v741_v21 = vmul.f32 %v665_v17, %v581_v13  ;;  %v1011_v8 = vpop.eup %1010  ;;  %v582_v13 = vmul.f32 %v1005_v33, %v1259_v44  ;;  %1042 = vpow2.f32 %v855_v5 }
 0x142   :  { %v1013_v12 = vpop.eup %1012  ;;  %1044 = vpow2.f32 %v854_v9  ;;  %v569_v42 = vmul.f32 %v1011_v8, %v1261_v45 }
 0x143   :  { %771 = vst.msk [vmem:[%s1539_s2 + $0x80] sm:$0xff] %vm754_vm2, %v738_v20  ;;  %774 = vst.msk [vmem:[%s1539_s2 + $0x98] sm:$0xff] %vm754_vm2, %v741_v21  ;;  %v1015_v37 = vpop.eup %1014  ;;  %1046 = vrcp.f32 %v477_v35  ;;  %v568_v44 = vmul.f32 %v1013_v12, %v1269_v47 }
 0x144   :  { %v663_v28 = vpop.permute.xlu0 %662  ;;  %v631_v29 = vpop.permute.xlu1 %630  ;;  %v493_v21 = vadd.f32 1.0, %v1015_v37 }
 0x145   :  { %v740_v32 = vmul.f32 %v663_v28, %v580_v36  ;;  %v724_v34 = vmul.f32 %v631_v29, %v564_v38  ;;  %v1017_v14 = vpop.eup %1016  ;;  %1048 = vrcp.f32 %v476_v41 }
 0x146   :  { %v1019_v17 = vpop.eup %1018  ;;  %v492_v23 = vadd.f32 1.0, %v1017_v14  ;;  %1050 = vrcp.f32 %v493_v21 }
 0x147   :  { %773 = vst.msk [vmem:[%s1539_s2 + $0x90] sm:$0xff] %vm754_vm2, %v740_v32  ;;  %757 = vst.msk [vmem:[%s1539_s2 + $0x10] sm:$0xff] %vm754_vm2, %v724_v34  ;;  %v1021_v20 = vpop.eup %1020  ;;  %v585_v45 = vmul.f32 %v1019_v17, %v1267_v46 }
 0x148   :  { %v637_v6 = vpop.permute.xlu1 %636  ;;  %v635_v7 = vpop.permute.xlu0 %634  ;;  %1052 = vrcp.f32 %v492_v23  ;;  %v584_v47 = vmul.f32 %v1021_v20, %v1275_v48 }
 0x149   :  { %v727_v10 = vmul.f32 %v637_v6, %v567_v39  ;;  %v726_v11 = vmul.f32 %v635_v7, %v566_v3  ;;  %v1023_v22 = vpop.eup %1022 }
 0x14a   :  { %v1025_v24 = vpop.eup %1024  ;;  %v479_v29 = vadd.f32 1.0, %v1023_v22 }
 0x14b   :  { %760 = vst.msk [vmem:[%s1539_s2 + $0x28] sm:$0xff] %vm754_vm2, %v727_v10  ;;  %759 = vst.msk [vmem:[%s1539_s2 + $0x20] sm:$0xff] %vm754_vm2, %v726_v11  ;;  %v1027_v38 = vpop.eup %1026  ;;  %v478_v31 = vadd.f32 1.0, %v1025_v24 }
 0x14c   :  { %v669_v15 = vpop.permute.xlu1 %668  ;;  %v667_v16 = vpop.permute.xlu0 %666  ;;  %1054 = vrcp.f32 %v479_v29  ;;  %v495_v3 = vadd.f32 1.0, %v1027_v38 }
 0x14d   :  { %v743_v18 = vmul.f32 %v669_v15, %v583_v43  ;;  %v742_v19 = vmul.f32 %v667_v16, %v582_v13  ;;  %v1029_v28 = vpop.eup %1028  ;;  %1056 = vrcp.f32 %v478_v31 }
 0x14e   :  { %v1031_v30 = vpop.eup %1030  ;;  %v494_v5 = vadd.f32 1.0, %v1029_v28  ;;  %1058 = vrcp.f32 %v495_v3 }
 0x14f   :  { %776 = vst.msk [vmem:[%s1539_s2 + $0xa8] sm:$0xff] %vm754_vm2, %v743_v18  ;;  %775 = vst.msk [vmem:[%s1539_s2 + $0xa0] sm:$0xff] %vm754_vm2, %v742_v19  ;;  %v1033_v32 = vpop.eup %1032  ;;  %v571_v46 = vmul.f32 %v1031_v30, %v1277_v49 }
 0x150   :  { %v641_v25 = vpop.permute.xlu1 %640  ;;  %v639_v36 = vpop.permute.xlu0 %638  ;;  %v570_v48 = vmul.f32 %v1033_v32, %v1285_v51  ;;  %1060 = vrcp.f32 %v494_v5 }
 0x151   :  { %v729_v26 = vmul.f32 %v641_v25, %v569_v42  ;;  %v728_v27 = vmul.f32 %v639_v36, %v568_v44  ;;  %v1035_v1 = vpop.eup %1034 }
 0x152   :  { %v1037_v39 = vpop.eup %1036  ;;  %v481_v35 = vadd.f32 1.0, %v1035_v1 }
 0x153   :  { %762 = vst.msk [vmem:[%s1539_s2 + $0x38] sm:$0xff] %vm754_vm2, %v729_v26  ;;  %761 = vst.msk [vmem:[%s1539_s2 + $0x30] sm:$0xff] %vm754_vm2, %v728_v27  ;;  %v1039_v4 = vpop.eup %1038  ;;  %v480_v41 = vadd.f32 1.0, %v1037_v39 }
 0x154   :  { %v673_v34 = vpop.permute.xlu1 %672  ;;  %v671_v33 = vpop.permute.xlu0 %670  ;;  %v587_v49 = vmul.f32 %v1039_v4, %v1283_v50  ;;  %1062 = vrcp.f32 %v481_v35 }
 0x155   :  { %v745_v2 = vmul.f32 %v673_v34, %v585_v45  ;;  %v744_v40 = vmul.f32 %v671_v33, %v584_v47  ;;  %v1041_v6 = vpop.eup %1040  ;;  %1064 = vrcp.f32 %v480_v41 }
 0x156   :  { %v1043_v9 = vpop.eup %1042  ;;  %v586_v51 = vmul.f32 %v1041_v6, %v1291_v52 }
 0x157   :  { %778 = vst.msk [vmem:[%s1539_s2 + $0xb8] sm:$0xff] %vm754_vm2, %v745_v2  ;;  %777 = vst.msk [vmem:[%s1539_s2 + $0xb0] sm:$0xff] %vm754_vm2, %v744_v40  ;;  %v1045_v12 = vpop.eup %1044  ;;  %v497_v17 = vadd.f32 1.0, %v1043_v9 }
 0x158   :  { %v645_v7 = vpop.permute.xlu1 %644  ;;  %v643_v8 = vpop.permute.xlu0 %642  ;;  %v496_v19 = vadd.f32 1.0, %v1045_v12 }
 0x159   :  { %v731_v10 = vmul.f32 %v645_v7, %v571_v46  ;;  %v730_v11 = vmul.f32 %v643_v8, %v570_v48  ;;  %v1047_v37 = vpop.eup %1046  ;;  %1066 = vrcp.f32 %v497_v17 }
 0x15a   :  { %v1049_v43 = vpop.eup %1048  ;;  %v573_v50 = vmul.f32 %v1047_v37, %v1293_v53  ;;  %1068 = vrcp.f32 %v496_v19 }
 0x15b   :  { %764 = vst.msk [vmem:[%s1539_s2 + $0x48] sm:$0xff] %vm754_vm2, %v731_v10  ;;  %763 = vst.msk [vmem:[%s1539_s2 + $0x40] sm:$0xff] %vm754_vm2, %v730_v11  ;;  %v1051_v18 = vpop.eup %1050  ;;  %v572_v52 = vmul.f32 %v1049_v43, %v1301_v55 }
 0x15c   :  { %v677_v13 = vpop.permute.xlu1 %676  ;;  %v675_v14 = vpop.permute.xlu0 %674  ;;  %v589_v53 = vmul.f32 %v1051_v18, %v1299_v54 }
 0x15d   :  { %v747_v15 = vmul.f32 %v677_v13, %v587_v49  ;;  %v746_v16 = vmul.f32 %v675_v14, %v586_v51  ;;  %v1053_v20 = vpop.eup %1052 }
 0x15e   :  { %v1055_v44 = vpop.eup %1054  ;;  %v588_v55 = vmul.f32 %v1053_v20, %v1307_v56 }
 0x15f   :  { %780 = vst.msk [vmem:[%s1539_s2 + $0xc8] sm:$0xff] %vm754_vm2, %v747_v15  ;;  %779 = vst.msk [vmem:[%s1539_s2 + $0xc0] sm:$0xff] %vm754_vm2, %v746_v16  ;;  %v1057_v24 = vpop.eup %1056  ;;  %v575_v54 = vmul.f32 %v1055_v44, %v1309_v57 }
 0x160   :  { %v649_v21 = vpop.permute.xlu1 %648  ;;  %v647_v22 = vpop.permute.xlu0 %646  ;;  %v574_v56 = vmul.f32 %v1057_v24, %v1317_v59 }
 0x161   :  { %v733_v23 = vmul.f32 %v649_v21, %v573_v50  ;;  %v732_v42 = vmul.f32 %v647_v22, %v572_v52  ;;  %v1059_v27 = vpop.eup %1058 }
 0x162   :  { %v1061_v28 = vpop.eup %1060  ;;  %v591_v57 = vmul.f32 %v1059_v27, %v1315_v58 }
 0x163   :  { %766 = vst.msk [vmem:[%s1539_s2 + $0x58] sm:$0xff] %vm754_vm2, %v733_v23  ;;  %765 = vst.msk [vmem:[%s1539_s2 + $0x50] sm:$0xff] %vm754_vm2, %v732_v42  ;;  %v1063_v47 = vpop.eup %1062  ;;  %v590_v59 = vmul.f32 %v1061_v28, %v1323_v60 }
 0x164   :  { %v681_v25 = vpop.permute.xlu1 %680  ;;  %v679_v36 = vpop.permute.xlu0 %678  ;;  %v577_v58 = vmul.f32 %v1063_v47, %v1325_v61 }
 0x165   :  { %v749_v38 = vmul.f32 %v681_v25, %v589_v53  ;;  %v748_v26 = vmul.f32 %v679_v36, %v588_v55  ;;  %v1065_v32 = vpop.eup %1064 }
 0x166   :  { %v1067_v40 = vpop.eup %1066  ;;  %v576_v39 = vmul.f32 %v1065_v32, %v1333_v63 }
 0x167   :  { %782 = vst.msk [vmem:[%s1539_s2 + $0xd8] sm:$0xff] %vm754_vm2, %v749_v38  ;;  %781 = vst.msk [vmem:[%s1539_s2 + $0xd0] sm:$0xff] %vm754_vm2, %v748_v26  ;;  %v1069_v60 = vpop.eup %1068  ;;  %v593_v63 = vmul.f32 %v1067_v40, %v1331_v62 }
 0x168   :  { %v653_v29 = vpop.permute.xlu1 %652  ;;  %v651_v30 = vpop.permute.xlu0 %650  ;;  %v592_v48 = vmul.f32 %v1069_v60, %v1339_v0 }
 0x169   :  { %v735_v31 = vmul.f32 %v653_v29, %v575_v54  ;;  %v734_v45 = vmul.f32 %v651_v30, %v574_v56 }
 0x16b   :  { %768 = vst.msk [vmem:[%s1539_s2 + $0x68] sm:$0xff] %vm754_vm2, %v735_v31  ;;  %767 = vst.msk [vmem:[%s1539_s2 + $0x60] sm:$0xff] %vm754_vm2, %v734_v45 }
 0x16c   :  { %v685_v34 = vpop.permute.xlu1 %684  ;;  %v683_v33 = vpop.permute.xlu0 %682 }
 0x16d   :  { %v751_v1 = vmul.f32 %v685_v34, %v591_v57  ;;  %v750_v2 = vmul.f32 %v683_v33, %v590_v59 }
 0x16f   :  { %784 = vst.msk [vmem:[%s1539_s2 + $0xe8] sm:$0xff] %vm754_vm2, %v751_v1  ;;  %783 = vst.msk [vmem:[%s1539_s2 + $0xe0] sm:$0xff] %vm754_vm2, %v750_v2 }
 0x170   :  { %v657_v3 = vpop.permute.xlu1 %656  ;;  %v655_v4 = vpop.permute.xlu0 %654 }
 0x171   :  { %v737_v5 = vmul.f32 %v657_v3, %v577_v58  ;;  %v736_v46 = vmul.f32 %v655_v4, %v576_v39 }
 0x173   :  { %770 = vst.msk [vmem:[%s1539_s2 + $0x78] sm:$0xff] %vm754_vm2, %v737_v5  ;;  %769 = vst.msk [vmem:[%s1539_s2 + $0x70] sm:$0xff] %vm754_vm2, %v736_v46 }
 0x174   :  { %v689_v61 = vpop.permute.xlu1 %688  ;;  %v687_v6 = vpop.permute.xlu0 %686 }
 0x175   :  { %v753_v7 = vmul.f32 %v689_v61, %v593_v63  ;;  %v752_v8 = vmul.f32 %v687_v6, %v592_v48 }
 0x177   :  { %786 = vst.msk [vmem:[%s1539_s2 + $0xf8] sm:$0xff] %vm754_vm2, %v753_v7  ;;  %785 = vst.msk [vmem:[%s1539_s2 + $0xf0] sm:$0xff] %vm754_vm2, %v752_v8 }

</bundles_post_ra>
